<compile_context>
chip_gen: v7x
topology: tpu7x:2x2x1
jax: 0.10.0
libtpu: 0.0.40
codegen_flags: <defaults>
</compile_context>

<pallas_src>
import functools

import jax
import jax.numpy as jnp
import numpy as np
from jax.experimental import pallas as pl
from jax.experimental.pallas import tpu as pltpu

LANE = 128  # TPU lane width; channel tiles are lane-dense multiples of this.


# ----------------------------- Pallas kernel ------------------------------- #
def _arima_plus_kernel(x_ref, wT_ref, bias_ref, o_ref):
    """One (batch, channel-tile) grid step.

    x_ref   : VMEM (S, TC)  input-series tile (compute dtype, e.g. bf16)
    wT_ref  : VMEM (P, S)   folded total weight, transposed (resident)
    bias_ref: VMEM (P, 1)   folded total bias, f32 (resident)
    o_ref   : VMEM (P, TC)  ensemble prediction tile, f32
    """
    acc = jnp.dot(wT_ref[...], x_ref[...], preferred_element_type=jnp.float32)
    o_ref[...] = (acc + bias_ref[...]).astype(o_ref.dtype)


# --------------------------- host-side folding ------------------------------ #
def build_moving_avg_matrix(seq_len: int, kernel_size: int) -> np.ndarray:
    """Linear operator A such that (x @ A) == DLinear moving_avg(x).

    Matches AvgPool1d(kernel_size, stride=1) on a series padded by repeating
    the first/last value (kernel_size-1)//2 times on each side (odd kernel).
    """
    A = np.zeros((seq_len, seq_len), np.float32)
    half = (kernel_size - 1) // 2
    for t in range(seq_len):
        for j in range(t - half, t - half + kernel_size):
            s = min(max(j, 0), seq_len - 1)
            A[s, t] += 1.0 / kernel_size
    return A


def fold_params(params, seq_len: int, pred_len: int, compute_dtype=jnp.bfloat16):
    """Constant-fold DLinear + AR(p) + ensemble into one [S,P] affine operator."""
    A = np.asarray(params["A"], np.float64)                    # [S, S]
    Ws = np.asarray(params["ws"], np.float64)                  # [S, P]
    Wt = np.asarray(params["wt"], np.float64)                  # [S, P]
    b_dl = np.asarray(params["bias"], np.float64).reshape(-1)  # [P]
    phi = np.asarray(params["phi"], np.float64)                # [p+1]
    S, P = seq_len, pred_len
    p = phi.shape[0] - 1

    # DLinear fold:  dlin = x @ (Ws + A @ (Wt - Ws)) + b_dl
    W_dl = Ws + A @ (Wt - Ws)                                  # [S, P]

    # AR fold: track each state value as (const, coeffs over the p seeds),
    # where seed j is x[:, S-1-j, :].
    const = np.zeros(p, np.float64)
    coef = np.eye(p, dtype=np.float64)                         # coef[i, j]
    c_vec = np.zeros(P, np.float64)
    psi_seed = np.zeros((p, P), np.float64)
    for t in range(P):
        nc = phi[0] + sum(phi[1 + i] * const[i] for i in range(p))
        nv = sum(phi[1 + i] * coef[i] for i in range(p))
        c_vec[t] = nc
        psi_seed[:, t] = nv
        const = np.concatenate([[nc], const[:-1]])
        coef = np.concatenate([nv[None, :], coef[:-1]], axis=0)
    Psi = np.zeros((S, P), np.float64)
    for j in range(p):
        Psi[S - 1 - j, :] = psi_seed[j, :]

    # Ensemble fold.
    W_total = 0.5 * (W_dl + Psi)                               # [S, P]
    b_total = 0.5 * (b_dl + c_vec)                             # [P]
    return {
        "wT": jnp.asarray(W_total.T, compute_dtype),           # [P, S]  (MXU dtype)
        "bias": jnp.asarray(b_total.reshape(P, 1), jnp.float32),  # [P, 1] (f32 epilogue)
    }


# ------------------------------ wrapper ------------------------------------ #
@functools.partial(jax.jit, static_argnames=("channel_tile",))
def arima_plus_forward(x_enc, x_mark_enc, x_dec, x_mark_dec, folded, *,
                       channel_tile=LANE):
    """Forward pass. x_enc: [B, seq_len, C] -> [B, pred_len, C] float32."""
    del x_mark_enc, x_dec, x_mark_dec  # DLinear / AR branches ignore time marks

    wT, bias = folded["wT"], folded["bias"]
    P, S = wT.shape
    B, S_in, C = x_enc.shape
    assert S_in == S, (S_in, S)

    # Cast to the compute dtype (bf16 -> full-rate MXU, half HBM traffic);
    # accumulation stays f32 via preferred_element_type in the kernel.
    x = x_enc.astype(wT.dtype)

    # Pad channels to a multiple of 128 so stores are lane-dense (unmasked vst).
    TC = channel_tile
    Cp = pl.cdiv(C, TC) * TC
    if Cp != C:
        x = jnp.pad(x, ((0, 0), (0, 0), (0, Cp - C)))
    # NOTE: for very small C one could fold B into the MXU N dim instead of
    # padding; skipped here since realistic channel counts are >= 128.

    itemsize = x.dtype.itemsize
    out = pl.pallas_call(
        _arima_plus_kernel,
        out_shape=jax.ShapeDtypeStruct((B, P, Cp), jnp.float32),
        grid=(B, Cp // TC),
        in_specs=[
            # x tile: batch squeezed, full S, one lane-dense channel tile.
            pl.BlockSpec((None, S, TC), lambda b, c: (b, 0, c)),
            # Folded weight: constant index_map -> DMA'd once, VMEM-resident.
            pl.BlockSpec((P, S), lambda b, c: (0, 0)),
            # Bias: constant index_map -> VMEM-resident.
            pl.BlockSpec((P, 1), lambda b, c: (0, 0)),
        ],
        out_specs=pl.BlockSpec((None, P, TC), lambda b, c: (b, 0, c)),
        compiler_params=pltpu.CompilerParams(
            # Both axes independent -> shard across v7x's 2 TensorCores.
            dimension_semantics=("parallel", "parallel")),
        cost_estimate=pl.CostEstimate(
            flops=2 * B * P * S * Cp,
            transcendentals=0,
            bytes_accessed=(B * S * Cp * itemsize      # x
                            + P * S * itemsize         # wT
                            + B * P * Cp * 4)),        # out (f32)
    )(x, wT, bias)
    return out[:, :, :C]


# --------------------------- pure-JAX reference ----------------------------- #
def reference_forward(x_enc, params, pred_len):
    """Unfolded semantics (DLinear decomposition + recursive AR + ensemble)."""
    x = x_enc.astype(jnp.float32)                              # [B, S, C]
    S = x.shape[1]
    # DLinear branch
    trend = jnp.einsum("bsc,st->btc", x, params["A"])          # [B, S, C]
    seasonal = x - trend
    dlin = (jnp.einsum("bsc,sp->bpc", seasonal, params["ws"])
            + jnp.einsum("bsc,sp->bpc", trend, params["wt"])
            + params["bias"].reshape(1, -1, 1))                # [B, P, C]
    # AR(p) recursive branch
    phi = params["phi"]
    p = phi.shape[0] - 1
    state = [x[:, S - 1 - i, :] for i in range(p)]             # each [B, C]
    preds = []
    for _ in range(pred_len):
        nxt = phi[0] + sum(phi[1 + i] * state[i] for i in range(p))
        preds.append(nxt)
        state = [nxt] + state[:-1]
    arima = jnp.stack(preds, axis=1)                           # [B, P, C]
    return 0.5 * (dlin + arima)


# --------------------------------- main ------------------------------------ #
if __name__ == "__main__":
    # Small config consistent with the module's forecast path.
    B, C = 2, 4                 # batch, enc_in channels
    SEQ_LEN, LABEL_LEN, PRED_LEN = 16, 4, 8
    MOVING_AVG = 9              # odd decomposition kernel
    AR_P = 2                    # AR order for the "ARIMA" branch

    key = jax.random.PRNGKey(0)
    k_x, k_xm, k_xd, k_xmd, k_ws, k_wt, k_bs, k_bt = jax.random.split(key, 8)

    # Deterministic inputs (x_mark_*, x_dec are accepted but unused, as in DLinear).
    x_enc = jax.random.normal(k_x, (B, SEQ_LEN, C), jnp.float32)
    x_mark_enc = jax.random.normal(k_xm, (B, SEQ_LEN, 4), jnp.float32)
    x_dec = jax.random.normal(k_xd, (B, LABEL_LEN + PRED_LEN, C), jnp.float32)
    x_mark_dec = jax.random.normal(k_xmd, (B, LABEL_LEN + PRED_LEN, 4), jnp.float32)

    # Deterministic parameters (unfolded, as the PyTorch module would hold them).
    w_seasonal = jax.random.normal(k_ws, (PRED_LEN, SEQ_LEN), jnp.float32) * 0.1
    w_trend = jax.random.normal(k_wt, (PRED_LEN, SEQ_LEN), jnp.float32) * 0.1
    b_seasonal = jax.random.normal(k_bs, (PRED_LEN,), jnp.float32) * 0.01
    b_trend = jax.random.normal(k_bt, (PRED_LEN,), jnp.float32) * 0.01
    params = {
        "A": jnp.asarray(build_moving_avg_matrix(SEQ_LEN, MOVING_AVG)),
        "ws": jnp.asarray(w_seasonal.T),                      # [S, P]
        "wt": jnp.asarray(w_trend.T),                         # [S, P]
        "bias": (b_seasonal + b_trend)[None, :],              # [1, P]
        # AR(2) coefficients [intercept, phi_1, phi_2] (stand-in for ARIMA fit)
        "phi": jnp.array([0.01, 0.6, 0.3], jnp.float32),
    }

    ref = reference_forward(x_enc, params, PRED_LEN)

    # f32 path: tight structural check of the host-side constant fold.
    folded_f32 = fold_params(params, SEQ_LEN, PRED_LEN, compute_dtype=jnp.float32)
    out_f32 = jax.block_until_ready(
        arima_plus_forward(x_enc, x_mark_enc, x_dec, x_mark_dec, folded_f32))
    assert out_f32.shape == (B, PRED_LEN, C), out_f32.shape
    np.testing.assert_allclose(np.asarray(out_f32), np.asarray(ref),
                               rtol=1e-4, atol=1e-4)

    # bf16 path (production dtype): bf16 MXU inputs, f32 accumulation/epilogue.
    folded_bf16 = fold_params(params, SEQ_LEN, PRED_LEN, compute_dtype=jnp.bfloat16)
    out_bf16 = jax.block_until_ready(
        arima_plus_forward(x_enc, x_mark_enc, x_dec, x_mark_dec, folded_bf16))
    assert out_bf16.shape == (B, PRED_LEN, C), out_bf16.shape
    np.testing.assert_allclose(np.asarray(out_bf16), np.asarray(ref),
                               rtol=3e-2, atol=3e-2)

    print("KERNEL_OK")
</pallas_src>

<mosaic_0001>
module attributes {stable_mosaic.version = 11 : i64} {
  func.func @_arima_plus_kernel(%arg0: i32, %arg1: i32, %arg2: memref<1x16x128xf32, #tpu.memory_space<vmem>>, %arg3: memref<8x16xf32, #tpu.memory_space<vmem>>, %arg4: memref<8x1xf32, #tpu.memory_space<vmem>>, %arg5: memref<1x8x128xf32, #tpu.memory_space<vmem>>) attributes {dimension_semantics = [#tpu.dimension_semantics<parallel>, #tpu.dimension_semantics<parallel>], iteration_bounds = array<i64: 2, 1>, scalar_prefetch = 0 : i64, scratch_operands = 0 : i64, tpu.core_type = #tpu.core_type<tc>, window_params = [{transform_indices = @transform_0, window_bounds = array<i64: 1, 16, 128>}, {pipeline_mode = #tpu.pipeline_mode<synchronous>, transform_indices = @transform_1, window_bounds = array<i64: 8, 16>}, {pipeline_mode = #tpu.pipeline_mode<synchronous>, transform_indices = @transform_2, window_bounds = array<i64: 8, 1>}, {transform_indices = @transform_3, window_bounds = array<i64: 1, 8, 128>}]} {
    %c0 = arith.constant 0 : index
    %c0_0 = arith.constant 0 : index
    %0 = vector.load %arg3[%c0, %c0_0] : memref<8x16xf32, #tpu.memory_space<vmem>>, vector<8x16xf32>
    %c0_1 = arith.constant 0 : index
    %c0_2 = arith.constant 0 : index
    %c0_3 = arith.constant 0 : index
    %1 = vector.load %arg2[%c0_1, %c0_2, %c0_3] : memref<1x16x128xf32, #tpu.memory_space<vmem>>, vector<1x16x128xf32>
    %2 = vector.shape_cast %1 : vector<1x16x128xf32> to vector<16x128xf32>
    %cst = arith.constant dense<0.000000e+00> : vector<8x128xf32>
    %3 = tpu.matmul %0, %2, %cst {dimension_numbers = #tpu.dot_dimension_numbers<[1], [0], [0], [1], [0, 0, 1, 1], [], []>} : vector<8x16xf32>, vector<16x128xf32>, vector<8x128xf32> -> vector<8x128xf32>
    %c0_4 = arith.constant 0 : index
    %c0_5 = arith.constant 0 : index
    %4 = vector.load %arg4[%c0_4, %c0_5] : memref<8x1xf32, #tpu.memory_space<vmem>>, vector<8x1xf32>
    %5 = vector.broadcast %4 : vector<8x1xf32> to vector<8x128xf32>
    %6 = arith.addf %3, %5 : vector<8x128xf32>
    %c0_6 = arith.constant 0 : index
    %c0_7 = arith.constant 0 : index
    %c0_8 = arith.constant 0 : index
    %7 = vector.load %arg5[%c0_6, %c0_7, %c0_8] : memref<1x8x128xf32, #tpu.memory_space<vmem>>, vector<1x8x128xf32>
    %8 = vector.shape_cast %7 : vector<1x8x128xf32> to vector<8x128xf32>
    %9 = vector.shape_cast %6 : vector<8x128xf32> to vector<1x8x128xf32>
    tpu.vector_store %arg5[%c0_6, %c0_7, %c0_8], %9 {strides = array<i32>} : memref<1x8x128xf32, #tpu.memory_space<vmem>>, vector<1x8x128xf32>,
    return
  }
  func.func @transform_0(%arg0: i32, %arg1: i32) -> (i32, i32, i32) {
    %c0_i32 = arith.constant 0 : i32
    %c0_i32_0 = arith.constant 0 : i32
    return %arg0, %c0_i32, %arg1 : i32, i32, i32
  }
  func.func @transform_1(%arg0: i32, %arg1: i32) -> (i32, i32) {
    %c0_i32 = arith.constant 0 : i32
    %c0_i32_0 = arith.constant 0 : i32
    %c0_i32_1 = arith.constant 0 : i32
    return %c0_i32, %c0_i32_0 : i32, i32
  }
  func.func @transform_2(%arg0: i32, %arg1: i32) -> (i32, i32) {
    %c0_i32 = arith.constant 0 : i32
    %c0_i32_0 = arith.constant 0 : i32
    %c0_i32_1 = arith.constant 0 : i32
    return %c0_i32, %c0_i32_0 : i32, i32
  }
  func.func @transform_3(%arg0: i32, %arg1: i32) -> (i32, i32, i32) {
    %c0_i32 = arith.constant 0 : i32
    %c0_i32_0 = arith.constant 0 : i32
    return %arg0, %c0_i32, %arg1 : i32, i32, i32
  }
}

</mosaic_0001>

<bundles_post_ra>
// kernel: arima_plus_forward.1
= control target key start
LH: loop header
LB: loop body
LE: loop exit
PB: predicated region body
PF: predicated region fallthrough
CT: control target
= control target key end

     0   :  { %s463_s12 = smov 0   ;;  %s465_s13 = smov 0   ;;  %s502_s0 = inlined_call_operand.vmem [shape: f32[2,16,128], index: 0, kind: input, shape index: {}]   ;;  %s503_s1 = inlined_call_operand.vmem [shape: f32[8,16], index: 1, kind: input, shape index: {}]   ;;  %s504_s2 = inlined_call_operand.vmem [shape: f32[8,1], index: 2, kind: input, shape index: {}]   ;;  %s505_s3 = inlined_call_operand.vmem [shape: f32[2,8,128], index: 3, kind: output, shape index: {}]  }
   0x1   :  { %s467_s14 = smov 0  }
   0x2 LB: > { %s25_s15 = sadd.s32 1, %s433_s13  ;;  %p365_p0 = scmp.ge.s32.totalorder %s437_s14, 1  ;;  %s437_s14 = sphi %s467_s14, %s13_s14   ;;  %s433_s13 = sphi %s465_s13, %s507_s13   ;;  %s429_s12 = sphi %s463_s12, %s506_s12  }
   0x3   : > { %p27_p1 = scmp.ge.s32.totalorder %s25_s15, 2  ;;  %p156_p2 = scmp.lt.s32.totalorder %s437_s14, 3 }
   0x5   : > { %s509_s15 = smov (%p27_p1, %s25_s15), 0  ;;  %p157_p3 = pnand %p365_p0, %p156_p2 }
   0x6   : > { %p185_p4 = scmp.lt.s32.totalorder (!%p157_p3), %s429_s12, 1  ;;  %v439_v0 = vmov (!%p157_p3), 0.0|0.0   ;;  %vm440_vm0 = vmmov (!%p157_p3), 0   ;;  %v441_v1 = vmov (!%p157_p3), 0.0   ;;  %v203_v2 = vld [vmem:[%s504_s2] sm:$0xff] (!%p157_p3)  ;;  %v442_v3 = vmov (!%p157_p3), 0  }
   0x7   : > { %160 = sbr.rel (%p157_p3) target bundleno = 238 (0xee), region = 32  ;;  %383 = vmatprep.subr.bf16.mxu0 (!%p157_p3), %v439_v0  ;;  %380 = vmatprep.mubr.msk.f32.mxu0 (!%p157_p3), %vm440_vm0, %v441_v1  ;;  %v200_v7 = vld [vmem:[%s503_s1] sm:$0xff] (!%p157_p3)  ;;  %vm209_vm1 = vcmask (!%p157_p3), 130048  }
   0x8   : > { %414 = vset.pattern.permute.xlu0 (!%p157_p3), %v442_v3 }
   0x9   : > { %206 = vperm.xlu0 (!%p157_p3), %414, %v203_v2  }
   0xe   : > { %s511_s12 = smov (!%p185_p4, %s429_s12), 1 }
   0xf   : > { %s372_s18 = sshll.u32 %s511_s12, 4  ;;  %s368_s24 = sshll.u32 %s511_s12, 3 }
  0x10   : > { %s192_s21 = scalar_lea.vmem %s502_s0, %s372_s18  ;;  %s199_s27 = scalar_lea.vmem %s505_s3, %s368_s24 }
  0x11   : > { %v201_v4 = vld [vmem:[%s192_s21] sm:$0xff]  ;;  %v202_v5 = vld [vmem:[%s192_s21 + $0x8] sm:$0xff] }
  0x12   : > { %v384_v6 = vpack.c.bf16 %v202_v5, %v201_v4 }
  0x14   : > { %385 = vmatpush3.bf16.msra.mxu0 %v384_v6 }
  0x17   : > { %381 = vmatmul.mubr.msk.f32.vlgmr.msra.gmra.mrb[0].mxu0 %vm209_vm1, %v200_v7 }
  0x88   : > { %v207_v8 = vpop.permute.xlu0 %206 }
  0xea   : > { %v279_v9 = vpop.f32.mrb[0].mxu0 }
  0xeb   : > { %v280_v10 = vadd.f32 %v279_v9, %v207_v8  ;;  %v382_v11 = vpop.f32.mrb[1].mxu0 }
  0xed   : > { %283 = vst [vmem:[%s199_s27] sm:$0xff] %v280_v10 }
  0xee PF: > { %s13_s14 = sadd.s32 1, %s437_s14   ;;  %s506_s12 = smov %s433_s13 }
  0xef   : > { %p10_p5 = scmp.ge.s32.totalorder %s13_s14, 4   ;;  %s507_s13 = smov %s509_s15 }
  0xf1   :  { %12 = sbr.rel (!%p10_p5) target bundleno = 2 (0x2), region = 62 }

</bundles_post_ra>
